<compile_context>
chip_gen: v6e
topology: v6e:2x2x1
jax: 0.10.0
libtpu: 0.0.40
codegen_flags: <defaults>
</compile_context>

<pallas_src>
import functools

import jax
import jax.numpy as jnp
from jax.experimental import pallas as pl
from jax.experimental.pallas import tpu as pltpu


_VMEM = pl.BlockSpec(memory_space=pltpu.MemorySpace.VMEM)


# ----------------------------------------------------------------------------
# Fused kernel: num_layers LSTM layers + LeakyReLU + Linear head
# ----------------------------------------------------------------------------
def _make_fused_kernel(num_layers, T):
    def kernel(x_ref, *refs):
        # refs layout:
        #   for each layer l: wih_t (D_in, 4H), whh_t (H, 4H), b (1, 4H)
        #   then: w_out_t (H, 1), b_out (1, 1), h0 (L, B, H), c0 (L, B, H)
        #   outputs: y (1, 1), hn (L, B, H), cn (L, B, H)
        n_w = 3 * num_layers
        w_out_ref, b_out_ref, h0_ref, c0_ref = refs[n_w:n_w + 4]
        y_ref, hn_ref, cn_ref = refs[n_w + 4:]
        _, B, H = hn_ref.shape

        seq = x_ref[...]                                   # (T*B, D_in of layer 0)
        h = None
        for l in range(num_layers):
            wih = refs[3 * l][...]                         # (D_in, 4H)
            whh = refs[3 * l + 1][...]                     # (H, 4H)
            # Hoisted bias broadcast (JAX does not CSE broadcast_in_dim).
            b = jnp.broadcast_to(refs[3 * l + 2][...], (B, 4 * H))

            # Hoisted input projection: one MXU matmul with M = T*B.
            gx = jnp.dot(seq, wih, preferred_element_type=jnp.float32)  # (T*B, 4H)

            h = h0_ref[l]                                  # (B, H)
            c = c0_ref[l]                                  # (B, H)
            outs = []
            for t in range(T):                             # static -> fully unrolled
                gates = (gx[t * B:(t + 1) * B]
                         + jnp.dot(h, whh, preferred_element_type=jnp.float32)
                         + b)                              # (B, 4H), PyTorch order i,f,g,o
                sg = jax.nn.sigmoid(gates)                 # one full-width EUP sigmoid
                g = jnp.tanh(gates[:, 2 * H:3 * H])        # tanh only on the g slice
                c = sg[:, H:2 * H] * c + sg[:, 0:H] * g
                h = sg[:, 3 * H:4 * H] * jnp.tanh(c)
                outs.append(h)
            hn_ref[l] = h
            cn_ref[l] = c
            seq = outs[0] if T == 1 else jnp.concatenate(outs, axis=0)

        # Head: LeakyReLU -> Dropout(identity in eval) -> Linear, on the last
        # batch row only (the module returns linear_out[-1]).  Exact because
        # T == 1  =>  lstm_out.reshape(B, T*H)[-1] == h[-1] of the last layer.
        feat = h[B - 1:B, :]                               # (1, H)
        act = jnp.where(feat >= 0.0, feat, 0.01 * feat)    # LeakyReLU(0.01)
        # TODO(synk): Dropout(p=0.2) is identity in eval mode; training-mode
        # dropout would not reproduce torch's RNG stream, so it is omitted.
        y_ref[...] = (jnp.dot(act, w_out_ref[...],
                              preferred_element_type=jnp.float32)
                      + b_out_ref[...])                    # (1, 1)

    return kernel


# ----------------------------------------------------------------------------
# Parameter preparation (ONCE, outside jit): transpose weights, fuse biases.
# ----------------------------------------------------------------------------
def prepare_params(raw):
    layers = []
    for lyr in raw["lstm"]:
        layers.append(dict(
            wih_t=jnp.transpose(lyr["w_ih"]).astype(jnp.float32),   # (D_in, 4H)
            whh_t=jnp.transpose(lyr["w_hh"]).astype(jnp.float32),   # (H, 4H)
            b=(lyr["b_ih"] + lyr["b_hh"]).reshape(1, -1).astype(jnp.float32),
        ))
    return dict(
        lstm=layers,
        w_out_t=jnp.transpose(raw["w_out"]).astype(jnp.float32),    # (H, 1)
        b_out=raw["b_out"].reshape(1, 1).astype(jnp.float32),
    )


# ----------------------------------------------------------------------------
# Forward wrapper (mirrors LstmNet.forward; returns (linear_out[-1], (h_n, c_n)))
# ----------------------------------------------------------------------------
def lstm_net_forward(params, x, hidden=None):
    B, T, D = x.shape
    layers = params["lstm"]
    L = len(layers)
    H = layers[0]["whh_t"].shape[0]

    if T != 1:
        raise ValueError("LstmNet's Linear(in_features=hidden_size) head only "
                         "type-checks for seq_len == 1.")

    if hidden is None:
        h0 = jnp.zeros((L, B, H), jnp.float32)
        c0 = jnp.zeros((L, B, H), jnp.float32)
    else:
        h0, c0 = hidden

    # (B, T, D) -> (T*B, D); for T == 1 this folds to a free reshape.
    x2d = jnp.transpose(x, (1, 0, 2)).reshape(T * B, D).astype(jnp.float32)

    args = [x2d]
    for lyr in layers:
        args += [lyr["wih_t"], lyr["whh_t"], lyr["b"]]
    args += [params["w_out_t"], params["b_out"], h0, c0]

    y, h_n, c_n = pl.pallas_call(
        _make_fused_kernel(L, T),
        out_shape=(
            jax.ShapeDtypeStruct((1, 1), jnp.float32),
            jax.ShapeDtypeStruct((L, B, H), jnp.float32),
            jax.ShapeDtypeStruct((L, B, H), jnp.float32),
        ),
        in_specs=[_VMEM] * len(args),
        out_specs=(_VMEM, _VMEM, _VMEM),
    )(*args)
    return y.reshape(1), (h_n, c_n)


# ----------------------------------------------------------------------------
# Pure-JAX reference (torch-layout params) for correctness validation.
# ----------------------------------------------------------------------------
def reference_forward(raw, x, hidden=None):
    B, T, _ = x.shape
    L = len(raw["lstm"])
    H = raw["lstm"][0]["w_hh"].shape[1]
    if hidden is None:
        h = [jnp.zeros((B, H), jnp.float32) for _ in range(L)]
        c = [jnp.zeros((B, H), jnp.float32) for _ in range(L)]
    else:
        h = [hidden[0][l] for l in range(L)]
        c = [hidden[1][l] for l in range(L)]
    outs = []
    for t in range(T):
        inp = x[:, t, :]
        for l, lyr in enumerate(raw["lstm"]):
            gates = (inp @ lyr["w_ih"].T + h[l] @ lyr["w_hh"].T
                     + lyr["b_ih"] + lyr["b_hh"])
            i = jax.nn.sigmoid(gates[:, 0 * H:1 * H])
            f = jax.nn.sigmoid(gates[:, 1 * H:2 * H])
            g = jnp.tanh(gates[:, 2 * H:3 * H])
            o = jax.nn.sigmoid(gates[:, 3 * H:4 * H])
            c[l] = f * c[l] + i * g
            h[l] = o * jnp.tanh(c[l])
            inp = h[l]
        outs.append(inp)
    lstm_out = jnp.stack(outs, axis=1)                       # (B, T, H)
    act = jnp.where(lstm_out >= 0.0, lstm_out, 0.01 * lstm_out)
    lin = act.reshape(B, T * H) @ raw["w_out"].T + raw["b_out"]
    return lin[-1], (jnp.stack(h), jnp.stack(c))


# ----------------------------------------------------------------------------
# Deterministic parameter init (torch nn.LSTM / nn.Linear uniform bounds)
# ----------------------------------------------------------------------------
def init_params(key, input_size, hidden_size, num_layers):
    bound = 1.0 / float(hidden_size) ** 0.5
    layers = []
    for l in range(num_layers):
        d_in = input_size if l == 0 else hidden_size
        key, k1, k2, k3, k4 = jax.random.split(key, 5)
        layers.append(dict(
            w_ih=jax.random.uniform(k1, (4 * hidden_size, d_in), jnp.float32,
                                    -bound, bound),
            w_hh=jax.random.uniform(k2, (4 * hidden_size, hidden_size),
                                    jnp.float32, -bound, bound),
            b_ih=jax.random.uniform(k3, (4 * hidden_size,), jnp.float32,
                                    -bound, bound),
            b_hh=jax.random.uniform(k4, (4 * hidden_size,), jnp.float32,
                                    -bound, bound),
        ))
    key, k5, k6 = jax.random.split(key, 3)
    w_out = jax.random.uniform(k5, (1, hidden_size), jnp.float32, -bound, bound)
    b_out = jax.random.uniform(k6, (1,), jnp.float32, -bound, bound)
    return dict(lstm=layers, w_out=w_out, b_out=b_out)


if __name__ == "__main__":
    input_size, hidden_size, num_layers = 16, 32, 2
    batch, seq_len = 8, 1   # seq_len=1 is required by the module's Linear head.

    key = jax.random.PRNGKey(0)
    kx, kp = jax.random.split(key)
    x = jax.random.normal(kx, (batch, seq_len, input_size), jnp.float32)
    raw = init_params(kp, input_size, hidden_size, num_layers)
    params = prepare_params(raw)           # transpose / fuse biases ONCE, outside jit

    fwd = jax.jit(functools.partial(lstm_net_forward, params))
    y_last, (h_n, c_n) = fwd(x)
    jax.block_until_ready((y_last, h_n, c_n))

    # Validate against a pure-JAX reference of the PyTorch module semantics.
    y_ref, (h_ref, c_ref) = reference_forward(raw, x)

    assert y_last.shape == (1,)
    assert h_n.shape == (num_layers, batch, hidden_size)
    assert c_n.shape == (num_layers, batch, hidden_size)
    assert jnp.allclose(y_last, y_ref, rtol=1e-4, atol=1e-4)
    assert jnp.allclose(h_n, h_ref, rtol=1e-4, atol=1e-4)
    assert jnp.allclose(c_n, c_ref, rtol=1e-4, atol=1e-4)
    print("KERNEL_OK")
</pallas_src>

<mosaic_0001>
module attributes {stable_mosaic.version = 11 : i64} {
  func.func @kernel(%arg0: memref<8x16xf32, #tpu.memory_space<vmem>>, %arg1: memref<16x128xf32, #tpu.memory_space<vmem>>, %arg2: memref<32x128xf32, #tpu.memory_space<vmem>>, %arg3: memref<1x128xf32, #tpu.memory_space<vmem>>, %arg4: memref<32x128xf32, #tpu.memory_space<vmem>>, %arg5: memref<32x128xf32, #tpu.memory_space<vmem>>, %arg6: memref<1x128xf32, #tpu.memory_space<vmem>>, %arg7: memref<32x1xf32, #tpu.memory_space<vmem>>, %arg8: memref<1x1xf32, #tpu.memory_space<vmem>>, %arg9: memref<2x8x32xf32, #tpu.memory_space<vmem>>, %arg10: memref<2x8x32xf32, #tpu.memory_space<vmem>>, %arg11: memref<1x1xf32, #tpu.memory_space<vmem>>, %arg12: memref<2x8x32xf32, #tpu.memory_space<vmem>>, %arg13: memref<2x8x32xf32, #tpu.memory_space<vmem>>) attributes {dimension_semantics = [], scalar_prefetch = 0 : i64, scratch_operands = 0 : i64, tpu.core_type = #tpu.core_type<tc>} {
    %c0 = arith.constant 0 : index
    %c0_0 = arith.constant 0 : index
    %0 = vector.load %arg0[%c0, %c0_0] : memref<8x16xf32, #tpu.memory_space<vmem>>, vector<8x16xf32>
    %c0_1 = arith.constant 0 : index
    %c0_2 = arith.constant 0 : index
    %1 = vector.load %arg1[%c0_1, %c0_2] : memref<16x128xf32, #tpu.memory_space<vmem>>, vector<16x128xf32>
    %c0_3 = arith.constant 0 : index
    %c0_4 = arith.constant 0 : index
    %2 = vector.load %arg2[%c0_3, %c0_4] : memref<32x128xf32, #tpu.memory_space<vmem>>, vector<32x128xf32>
    %c0_5 = arith.constant 0 : index
    %c0_6 = arith.constant 0 : index
    %3 = vector.load %arg3[%c0_5, %c0_6] : memref<1x128xf32, #tpu.memory_space<vmem>>, vector<1x128xf32>
    %4 = vector.shape_cast %3 : vector<1x128xf32> to vector<1x128xf32>
    %5 = vector.broadcast %4 : vector<1x128xf32> to vector<8x128xf32>
    %cst = arith.constant dense<0.000000e+00> : vector<8x128xf32>
    %6 = tpu.matmul %0, %1, %cst {dimension_numbers = #tpu.dot_dimension_numbers<[1], [0], [0], [1], [0, 0, 1, 1], [], []>} : vector<8x16xf32>, vector<16x128xf32>, vector<8x128xf32> -> vector<8x128xf32>
    %c0_7 = arith.constant 0 : index
    %c0_8 = arith.constant 0 : index
    %c0_9 = arith.constant 0 : index
    %7 = vector.load %arg9[%c0_7, %c0_8, %c0_9] : memref<2x8x32xf32, #tpu.memory_space<vmem>>, vector<1x8x32xf32>
    %8 = vector.shape_cast %7 : vector<1x8x32xf32> to vector<8x32xf32>
    %c0_10 = arith.constant 0 : index
    %c0_11 = arith.constant 0 : index
    %c0_12 = arith.constant 0 : index
    %9 = vector.load %arg10[%c0_10, %c0_11, %c0_12] : memref<2x8x32xf32, #tpu.memory_space<vmem>>, vector<1x8x32xf32>
    %10 = vector.shape_cast %9 : vector<1x8x32xf32> to vector<8x32xf32>
    %cst_13 = arith.constant dense<0.000000e+00> : vector<8x128xf32>
    %11 = tpu.matmul %8, %2, %cst_13 {dimension_numbers = #tpu.dot_dimension_numbers<[1], [0], [0], [1], [0, 0, 1, 1], [], []>} : vector<8x32xf32>, vector<32x128xf32>, vector<8x128xf32> -> vector<8x128xf32>
    %12 = arith.addf %6, %11 : vector<8x128xf32>
    %13 = arith.addf %12, %5 : vector<8x128xf32>
    %14 = arith.negf %13 : vector<8x128xf32>
    %15 = math.exp %14 : vector<8x128xf32>
    %cst_14 = arith.constant 1.000000e+00 : f32
    %16 = vector.broadcast %cst_14 : f32 to vector<8x128xf32>
    %17 = arith.addf %16, %15 : vector<8x128xf32>
    %18 = arith.divf %16, %17 : vector<8x128xf32>
    %19 = vector.extract_strided_slice %13 {offsets = [0, 64], sizes = [8, 32], strides = [1, 1]} : vector<8x128xf32> to vector<8x32xf32>
    %20 = math.tanh %19 : vector<8x32xf32>
    %21 = vector.extract_strided_slice %18 {offsets = [0, 32], sizes = [8, 32], strides = [1, 1]} : vector<8x128xf32> to vector<8x32xf32>
    %22 = arith.mulf %21, %10 : vector<8x32xf32>
    %23 = vector.extract_strided_slice %18 {offsets = [0, 0], sizes = [8, 32], strides = [1, 1]} : vector<8x128xf32> to vector<8x32xf32>
    %24 = arith.mulf %23, %20 : vector<8x32xf32>
    %25 = arith.addf %22, %24 : vector<8x32xf32>
    %26 = vector.extract_strided_slice %18 {offsets = [0, 96], sizes = [8, 32], strides = [1, 1]} : vector<8x128xf32> to vector<8x32xf32>
    %27 = math.tanh %25 : vector<8x32xf32>
    %28 = arith.mulf %26, %27 : vector<8x32xf32>
    %c0_15 = arith.constant 0 : index
    %c0_16 = arith.constant 0 : index
    %c0_17 = arith.constant 0 : index
    %29 = vector.load %arg12[%c0_15, %c0_16, %c0_17] : memref<2x8x32xf32, #tpu.memory_space<vmem>>, vector<1x8x32xf32>
    %30 = vector.shape_cast %29 : vector<1x8x32xf32> to vector<8x32xf32>
    %31 = vector.shape_cast %28 : vector<8x32xf32> to vector<1x8x32xf32>
    tpu.vector_store %arg12[%c0_15, %c0_16, %c0_17], %31 {strides = array<i32>} : memref<2x8x32xf32, #tpu.memory_space<vmem>>, vector<1x8x32xf32>,
    %c0_18 = arith.constant 0 : index
    %c0_19 = arith.constant 0 : index
    %c0_20 = arith.constant 0 : index
    %32 = vector.load %arg13[%c0_18, %c0_19, %c0_20] : memref<2x8x32xf32, #tpu.memory_space<vmem>>, vector<1x8x32xf32>
    %33 = vector.shape_cast %32 : vector<1x8x32xf32> to vector<8x32xf32>
    %34 = vector.shape_cast %25 : vector<8x32xf32> to vector<1x8x32xf32>
    tpu.vector_store %arg13[%c0_18, %c0_19, %c0_20], %34 {strides = array<i32>} : memref<2x8x32xf32, #tpu.memory_space<vmem>>, vector<1x8x32xf32>,
    %c0_21 = arith.constant 0 : index
    %c0_22 = arith.constant 0 : index
    %35 = vector.load %arg4[%c0_21, %c0_22] : memref<32x128xf32, #tpu.memory_space<vmem>>, vector<32x128xf32>
    %c0_23 = arith.constant 0 : index
    %c0_24 = arith.constant 0 : index
    %36 = vector.load %arg5[%c0_23, %c0_24] : memref<32x128xf32, #tpu.memory_space<vmem>>, vector<32x128xf32>
    %c0_25 = arith.constant 0 : index
    %c0_26 = arith.constant 0 : index
    %37 = vector.load %arg6[%c0_25, %c0_26] : memref<1x128xf32, #tpu.memory_space<vmem>>, vector<1x128xf32>
    %38 = vector.shape_cast %37 : vector<1x128xf32> to vector<1x128xf32>
    %39 = vector.broadcast %38 : vector<1x128xf32> to vector<8x128xf32>
    %cst_27 = arith.constant dense<0.000000e+00> : vector<8x128xf32>
    %40 = tpu.matmul %28, %35, %cst_27 {dimension_numbers = #tpu.dot_dimension_numbers<[1], [0], [0], [1], [0, 0, 1, 1], [], []>} : vector<8x32xf32>, vector<32x128xf32>, vector<8x128xf32> -> vector<8x128xf32>
    %c1 = arith.constant 1 : index
    %c0_28 = arith.constant 0 : index
    %c0_29 = arith.constant 0 : index
    %41 = vector.load %arg9[%c1, %c0_28, %c0_29] : memref<2x8x32xf32, #tpu.memory_space<vmem>>, vector<1x8x32xf32>
    %42 = vector.shape_cast %41 : vector<1x8x32xf32> to vector<8x32xf32>
    %c1_30 = arith.constant 1 : index
    %c0_31 = arith.constant 0 : index
    %c0_32 = arith.constant 0 : index
    %43 = vector.load %arg10[%c1_30, %c0_31, %c0_32] : memref<2x8x32xf32, #tpu.memory_space<vmem>>, vector<1x8x32xf32>
    %44 = vector.shape_cast %43 : vector<1x8x32xf32> to vector<8x32xf32>
    %cst_33 = arith.constant dense<0.000000e+00> : vector<8x128xf32>
    %45 = tpu.matmul %42, %36, %cst_33 {dimension_numbers = #tpu.dot_dimension_numbers<[1], [0], [0], [1], [0, 0, 1, 1], [], []>} : vector<8x32xf32>, vector<32x128xf32>, vector<8x128xf32> -> vector<8x128xf32>
    %46 = arith.addf %40, %45 : vector<8x128xf32>
    %47 = arith.addf %46, %39 : vector<8x128xf32>
    %48 = arith.negf %47 : vector<8x128xf32>
    %49 = math.exp %48 : vector<8x128xf32>
    %cst_34 = arith.constant 1.000000e+00 : f32
    %50 = vector.broadcast %cst_34 : f32 to vector<8x128xf32>
    %51 = arith.addf %50, %49 : vector<8x128xf32>
    %52 = arith.divf %50, %51 : vector<8x128xf32>
    %53 = vector.extract_strided_slice %47 {offsets = [0, 64], sizes = [8, 32], strides = [1, 1]} : vector<8x128xf32> to vector<8x32xf32>
    %54 = math.tanh %53 : vector<8x32xf32>
    %55 = vector.extract_strided_slice %52 {offsets = [0, 32], sizes = [8, 32], strides = [1, 1]} : vector<8x128xf32> to vector<8x32xf32>
    %56 = arith.mulf %55, %44 : vector<8x32xf32>
    %57 = vector.extract_strided_slice %52 {offsets = [0, 0], sizes = [8, 32], strides = [1, 1]} : vector<8x128xf32> to vector<8x32xf32>
    %58 = arith.mulf %57, %54 : vector<8x32xf32>
    %59 = arith.addf %56, %58 : vector<8x32xf32>
    %60 = vector.extract_strided_slice %52 {offsets = [0, 96], sizes = [8, 32], strides = [1, 1]} : vector<8x128xf32> to vector<8x32xf32>
    %61 = math.tanh %59 : vector<8x32xf32>
    %62 = arith.mulf %60, %61 : vector<8x32xf32>
    %c1_35 = arith.constant 1 : index
    %c0_36 = arith.constant 0 : index
    %c0_37 = arith.constant 0 : index
    %63 = vector.load %arg12[%c1_35, %c0_36, %c0_37] : memref<2x8x32xf32, #tpu.memory_space<vmem>>, vector<1x8x32xf32>
    %64 = vector.shape_cast %63 : vector<1x8x32xf32> to vector<8x32xf32>
    %65 = vector.shape_cast %62 : vector<8x32xf32> to vector<1x8x32xf32>
    tpu.vector_store %arg12[%c1_35, %c0_36, %c0_37], %65 {strides = array<i32>} : memref<2x8x32xf32, #tpu.memory_space<vmem>>, vector<1x8x32xf32>,
    %c1_38 = arith.constant 1 : index
    %c0_39 = arith.constant 0 : index
    %c0_40 = arith.constant 0 : index
    %66 = vector.load %arg13[%c1_38, %c0_39, %c0_40] : memref<2x8x32xf32, #tpu.memory_space<vmem>>, vector<1x8x32xf32>
    %67 = vector.shape_cast %66 : vector<1x8x32xf32> to vector<8x32xf32>
    %68 = vector.shape_cast %59 : vector<8x32xf32> to vector<1x8x32xf32>
    tpu.vector_store %arg13[%c1_38, %c0_39, %c0_40], %68 {strides = array<i32>} : memref<2x8x32xf32, #tpu.memory_space<vmem>>, vector<1x8x32xf32>,
    %69 = vector.extract_strided_slice %62 {offsets = [7, 0], sizes = [1, 32], strides = [1, 1]} : vector<8x32xf32> to vector<1x32xf32>
    %cst_41 = arith.constant 0.000000e+00 : f32
    %70 = vector.broadcast %cst_41 : f32 to vector<1x32xf32>
    %71 = arith.cmpf oge, %69, %70 : vector<1x32xf32>
    %cst_42 = arith.constant 0.00999999977 : f32
    %72 = vector.broadcast %cst_42 : f32 to vector<1x32xf32>
    %73 = arith.mulf %72, %69 : vector<1x32xf32>
    %74 = arith.select %71, %69, %73 : vector<1x32xi1>, vector<1x32xf32>
    %c0_43 = arith.constant 0 : index
    %c0_44 = arith.constant 0 : index
    %75 = vector.load %arg7[%c0_43, %c0_44] : memref<32x1xf32, #tpu.memory_space<vmem>>, vector<32x1xf32>
    %cst_45 = arith.constant dense<0.000000e+00> : vector<1x1xf32>
    %76 = tpu.matmul %74, %75, %cst_45 {dimension_numbers = #tpu.dot_dimension_numbers<[1], [0], [0], [1], [0, 0, 1, 1], [], []>} : vector<1x32xf32>, vector<32x1xf32>, vector<1x1xf32> -> vector<1x1xf32>
    %c0_46 = arith.constant 0 : index
    %c0_47 = arith.constant 0 : index
    %77 = vector.load %arg8[%c0_46, %c0_47] : memref<1x1xf32, #tpu.memory_space<vmem>>, vector<1x1xf32>
    %78 = arith.addf %76, %77 : vector<1x1xf32>
    %c0_48 = arith.constant 0 : index
    %c0_49 = arith.constant 0 : index
    %79 = vector.load %arg11[%c0_48, %c0_49] : memref<1x1xf32, #tpu.memory_space<vmem>>, vector<1x1xf32>
    tpu.vector_store %arg11[%c0_48, %c0_49], %78 {strides = array<i32>} : memref<1x1xf32, #tpu.memory_space<vmem>>, vector<1x1xf32>,
    return
  }
}

</mosaic_0001>

<bundles_post_ra>
// kernel: lstm_net_forward.1
= control target key start
LH: loop header
LB: loop body
LE: loop exit
PB: predicated region body
PF: predicated region fallthrough
CT: control target
= control target key end

     0   :  { %s1187_s0 = inlined_call_operand.hbm [shape: f32[8,16], index: 0, kind: input, shape index: {}]   ;;  %s1188_s1 = inlined_call_operand.hbm [shape: f32[16,128], index: 1, kind: input, shape index: {}]   ;;  %s1189_s2 = inlined_call_operand.hbm [shape: f32[32,128], index: 2, kind: input, shape index: {}]   ;;  %s1190_s3 = inlined_call_operand.hbm [shape: f32[1,128], index: 3, kind: input, shape index: {}]   ;;  %s1191_s4 = inlined_call_operand.hbm [shape: f32[32,128], index: 4, kind: input, shape index: {}]   ;;  %s1192_s5 = inlined_call_operand.hbm [shape: f32[32,128], index: 5, kind: input, shape index: {}]   ;;  %s1193_s6 = inlined_call_operand.vmem [shape: f32[1,128], index: 6, kind: input, shape index: {}]   ;;  %s1194_s7 = inlined_call_operand.vmem [shape: f32[32,1], index: 7, kind: input, shape index: {}]   ;;  %s1195_s8 = inlined_call_operand.<no memory space> [shape: f32[1,1], index: 8, kind: input, shape index: {}]   ;;  %s1196_s9 = inlined_call_operand.vmem [shape: f32[2,8,32], index: 9, kind: input, shape index: {}, may-alias: {9,10}]   ;;  %s1197_s10 = inlined_call_operand.vmem [shape: f32[2,8,32], index: 10, kind: input, shape index: {}, may-alias: {9,10}]   ;;  %s1198_s11 = inlined_call_operand.hbm [shape: f32[1,1], index: 11, kind: output, shape index: {0}]   ;;  %s1199_s12 = inlined_call_operand.hbm [shape: f32[2,8,32], index: 12, kind: output, shape index: {1}]   ;;  %s1200_s13 = inlined_call_operand.hbm [shape: f32[2,8,32], index: 13, kind: output, shape index: {2}]  }
   0x1   :  { %v19_v0 = vstv %s1195_s8 }
   0x2   :  { %20 = vst [vmem:[#allocation2] sm:$0x1] %v19_v0 }
   0x3   :  { %21 = vsyncpa [#allocation4], 0 }
   0x4   :  { %22 = vsyncpa [#allocation7], 0 }
   0x5   :  { %23 = vsyncpa [#allocation10], 0 }
   0x6   :  { %24 = vsyncpa [#allocation13], 0 }
   0x7   :  { %25 = vsyncpa [#allocation5], 0 }
   0x8   :  { %26 = vsyncpa [#allocation16], 0  ;;  %s975_s27 = smov [#allocation6]  }
   0x9   :  { %s42_s28 = sshll.u32 %s975_s27, 4  ;;  %s43_s28 = int_to_ptr.vmem [resolvable:$true] %s42_s28 }
   0xa   :  { %s791_s29 = scalar_lea.vmem %s43_s28, 256  ;;  %p796_p1 = scmp.lt.s32.totalorder %s43_s28, %s43_s28 }
   0xb   :  { %p792_p0 = scmp.ne.s32.totalorder %s43_s28, %s791_s29  ;;  %p797_p2 = scmp.lt.s32.totalorder %s791_s29, %s791_s29 }
   0xd   :  { %p798_p3 = por %p797_p2, %p796_p1 }
   0xf   :  { %p799_p4 = pnand %p798_p3, %p792_p0 }
  0x11   :  { %802 = shalt.err (!%p799_p4)
}
  0x12   :  { %s976_s30 = smov 128   ;;  %s977_s14 = smov 8  }
  0x13   :  { %48 = dma.hbm_to_vmem [thread:$0]  %s1188_s1, 256, %s43_s28, [#allocation7], %s976_s30, %s976_s30, %s977_s14  }
  0x14   :  { %s978_s16 = smov [#allocation9]   ;;  %s979_s18 = smov [#allocation3]  }
  0x15   :  { %s67_s17 = sshll.u32 %s978_s16, 4  ;;  %s33_s19 = sshll.u32 %s979_s18, 4  ;;  %s68_s17 = int_to_ptr.vmem [resolvable:$true] %s67_s17  ;;  %s34_s19 = int_to_ptr.vmem [resolvable:$true] %s33_s19 }
  0x16   :  { %s811_s20 = scalar_lea.vmem %s68_s17, 16  ;;  %s815_s21 = scalar_lea.vmem %s68_s17, 32 }
  0x17   :  { %p812_p5 = scmp.ne.s32.totalorder %s68_s17, %s811_s20  ;;  %p816_p6 = scmp.lt.s32.totalorder %s68_s17, %s68_s17 }
  0x18   :  { %p817_p7 = scmp.lt.s32.totalorder %s815_s21, %s811_s20 }
  0x1a   :  { %p818_p8 = por %p817_p7, %p816_p6 }
  0x1c   :  { %p819_p9 = pnand %p818_p8, %p812_p5 }
  0x1e   :  { %822 = shalt.err (!%p819_p9)
}
  0x1f   :  { %70 = dma.hbm_to_vmem [thread:$0]  %s1190_s3, 16, %s68_s17, [#allocation10]  }
  0x20   :  { %s831_s24 = scalar_lea.vmem %s34_s19, 128  ;;  %p836_p11 = scmp.lt.s32.totalorder %s34_s19, %s34_s19 }
  0x21   :  { %p832_p10 = scmp.ne.s32.totalorder %s34_s19, %s831_s24  ;;  %p837_p12 = scmp.lt.s32.totalorder %s831_s24, %s831_s24 }
  0x23   :  { %p838_p13 = por %p837_p12, %p836_p11 }
  0x25   :  { %p839_p0 = pnand %p838_p13, %p832_p10 }
  0x27   :  { %842 = shalt.err (!%p839_p0)
}
  0x28   :  { %36 = dma.hbm_to_vmem [thread:$0]  %s1187_s0, 128, %s34_s19, [#allocation4]  }
  0x29   :  { %s980_s26 = smov [#allocation8]   ;;  %s981_s28 = smov [#allocation11]  }
  0x2a   :  { %s54_s27 = sshll.u32 %s980_s26, 4  ;;  %s76_s29 = sshll.u32 %s981_s28, 4  ;;  %s55_s27 = int_to_ptr.vmem [resolvable:$true] %s54_s27  ;;  %s77_s29 = int_to_ptr.vmem [resolvable:$true] %s76_s29 }
  0x2b   :  { %s851_s8 = scalar_lea.vmem %s55_s27, 512  ;;  %p856_p2 = scmp.lt.s32.totalorder %s55_s27, %s55_s27 }
  0x2c   :  { %p852_p1 = scmp.ne.s32.totalorder %s55_s27, %s851_s8  ;;  %p857_p3 = scmp.lt.s32.totalorder %s851_s8, %s851_s8 }
  0x2e   :  { %p858_p4 = por %p857_p3, %p856_p2 }
  0x30   :  { %p859_p5 = pnand %p858_p4, %p852_p1 }
  0x32   :  { %862 = shalt.err (!%p859_p5)
}
  0x33   :  { %60 = dma.hbm_to_vmem [thread:$0]  %s1189_s2, 512, %s55_s27, [#allocation7], %s976_s30, %s976_s30, %s977_s14  }
  0x34   :  { %s871_s0 = scalar_lea.vmem %s77_s29, 512  ;;  %p876_p7 = scmp.lt.s32.totalorder %s77_s29, %s77_s29 }
  0x35   :  { %p872_p6 = scmp.ne.s32.totalorder %s77_s29, %s871_s0  ;;  %p877_p8 = scmp.lt.s32.totalorder %s871_s0, %s871_s0 }
  0x37   :  { %p878_p9 = por %p877_p8, %p876_p7 }
  0x39   :  { %p879_p10 = pnand %p878_p9, %p872_p6 }
  0x3b   :  { %882 = shalt.err (!%p879_p10)
}
  0x3c   :  { %82 = dma.hbm_to_vmem [thread:$0]  %s1191_s4, 512, %s77_s29, [#allocation10], %s976_s30, %s976_s30, %s977_s14  }
  0x3d   :  { %s982_s18 = smov [#allocation12]  }
  0x3e   :  { %s88_s19 = sshll.u32 %s982_s18, 4  ;;  %s89_s19 = int_to_ptr.vmem [resolvable:$true] %s88_s19 }
  0x3f   :  { %s891_s20 = scalar_lea.vmem %s89_s19, 512  ;;  %p896_p12 = scmp.lt.s32.totalorder %s89_s19, %s89_s19 }
  0x40   :  { %p892_p11 = scmp.ne.s32.totalorder %s89_s19, %s891_s20  ;;  %p897_p13 = scmp.lt.s32.totalorder %s891_s20, %s891_s20 }
  0x42   :  { %p898_p0 = por %p897_p13, %p896_p12 }
  0x44   :  { %p899_p1 = pnand %p898_p0, %p892_p11 }
  0x46   :  { %902 = shalt.err (!%p899_p1)
}
  0x47   :  { %94 = dma.hbm_to_vmem [thread:$0]  %s1192_s5, 512, %s89_s19, [#allocation13], %s976_s30, %s976_s30, %s977_s14  }
  0x48   :  { %963 = dma.done.wait [#allocation4], 128  }
  0x49   :  { %964 = vsyncadd [#allocation4], 4294967168 }
  0x4a   :  { %965 = dma.done.wait [#allocation7], 768  }
  0x4b   :  { %966 = vsyncadd [#allocation7], 4294966528 }
  0x4c   :  { %967 = dma.done.wait [#allocation10], 528  }
  0x4d   :  { %968 = vsyncadd [#allocation10], 4294966768 }
  0x4e   :  { %969 = dma.done.wait [#allocation13], 512  }
  0x4f   :  { %970 = vsyncadd [#allocation13], 4294966784  ;;  %v983_v1 = vmov 0.0   ;;  %vm984_vm0 = vmmov 0   ;;  %v129_v2 = vld [vmem:[#allocation8 + $0x18] sm:$0xff]  ;;  %v128_v3 = vld [vmem:[#allocation8 + $0x10] sm:$0xff] }
  0x50   :  { %700 = vmatprep.subr.mxu0 %v983_v1  ;;  %711 = vmatprep.subr.mxu1 %v983_v1  ;;  %v125_v4 = vld [vmem:[#allocation6 + $0x8] sm:$0xff]  ;;  %v124_v5 = vld [vmem:[#allocation6] sm:$0xff]  ;;  %v123_v6 = vld [vmem:[#allocation3] sm:$0xff]  ;;  %vm213_vm1 = vcmask 130048   ;;  %vm139_vm2 = vcmask 261120   ;;  %s985_s22 = smov 64  }
  0x51   :  { %715 = vmatprep.mubr.msk.f32.mxu1 %vm984_vm0, %v983_v1  ;;  %708 = vmatprep.mubr.msk.f32.mxu0 %vm984_vm0, %v983_v1  ;;  %v127_v7 = vld [vmem:[#allocation8 + $0x8] sm:$0xff]  ;;  %v126_v8 = vld [vmem:[#allocation8] sm:$0xff]  ;;  %s986_s1 = smov 32   ;;  %v332_v30 = vld [vmem:[#allocation12 + $0x10] sm:$0xff]  ;;  %s987_s18 = smov 96  }
  0x52   :  { %701 = vmatpush3.msra.mxu0 %v129_v2  ;;  %712 = vmatpush3.msra.mxu1 %v125_v4  ;;  %v137_v9 = vld [vmem:[%s1196_s9] sm:$0xff]  ;;  %v666_v12 = vld [vmem:[#allocation9] ss:$0 sm:$0xff]  ;;  %v328_v32 = vld [vmem:[#allocation11 + $0x10] sm:$0xff] }
  0x53   :  { %702 = vmatprep.subr.mxu0 %v983_v1  ;;  %713 = vmatprep.subr.mxu1 %v983_v1  ;;  %v138_v18 = vld [vmem:[%s1197_s10] sm:$0xff]  ;;  %v333_v29 = vld [vmem:[#allocation12 + $0x18] sm:$0xff]  ;;  %v671_v37 = vld [vmem:[%s1196_s9 + $0x8] sm:$0xff] }
  0x54   :  { %703 = vmatpush3.msra.mxu0 %v128_v3  ;;  %714 = vmatpush3.msra.mxu1 %v124_v5  ;;  %v329_v31 = vld [vmem:[#allocation11 + $0x18] sm:$0xff]  ;;  %v331_v33 = vld [vmem:[#allocation12 + $0x8] sm:$0xff]  ;;  %v330_v35 = vld [vmem:[#allocation12] sm:$0xff] }
  0x55   :  { %704 = vmatprep.subr.mxu0 %v983_v1  ;;  %716 = vmatmul.mubr.msk.f32.vlgmr.msra.gmra.mxu1 %vm213_vm1, %v123_v6  ;;  %v327_v34 = vld [vmem:[#allocation11 + $0x8] sm:$0xff]  ;;  %v326_v36 = vld [vmem:[#allocation11] sm:$0xff]  ;;  %v536_v63 = vld [vmem:[%s1194_s7 + $0x10] sm:$0xff] }
  0x56   :  { %705 = vmatpush3.msra.mxu0 %v127_v7  ;;  %718 = vmatprep.subr.mxu1 %v983_v1  ;;  %v672_v41 = vld [vmem:[%s1197_s10 + $0x8] sm:$0xff]  ;;  %v670_v45 = vld [vmem:[%s1193_s6] ss:$0 sm:$0xff]  ;;  %v537_v61 = vld [vmem:[%s1194_s7 + $0x18] sm:$0xff] }
  0x57   :  { %706 = vmatprep.subr.mxu0 %v983_v1  ;;  %726 = vmatprep.mubr.msk.f32.mxu1 %vm984_vm0, %v983_v1  ;;  %v535_v0 = vld [vmem:[%s1194_s7 + $0x8] sm:$0xff]  ;;  %v534_v2 = vld [vmem:[%s1194_s7] sm:$0xff]  ;;  %s988_s7 = smov [#allocation15]  }
  0x58   :  { %707 = vmatpush3.msra.mxu0 %v126_v8  ;;  %719 = vmatpush3.msra.mxu1 %v333_v29  ;;  %s632_s19 = sshll.u32 %s988_s7, 4  ;;  %s633_s19 = int_to_ptr.vmem [resolvable:$true] %s632_s19 }
  0x59   :  { %709 = vmatmul.mubr.msk.f32.vlgmr.msra.gmra.mxu0 %vm139_vm2, %v137_v9  ;;  %729 = vmatprep.subr.mxu0 %v983_v1  ;;  %s903_s20 = scalar_lea.vmem %s633_s19, 256  ;;  %p908_p3 = scmp.lt.s32.totalorder %s633_s19, %s633_s19 }
  0x5a   :  { %737 = vmatprep.mubr.msk.f32.mxu0 %vm984_vm0, %v983_v1  ;;  %730 = vmatpush3.msra.mxu0 %v329_v31  ;;  %p904_p2 = scmp.ne.s32.totalorder %s633_s19, %s903_s20  ;;  %p909_p4 = scmp.lt.s32.totalorder %s903_s20, %s903_s20 }
  0x5b   :  { %720 = vmatprep.subr.mxu1 %v983_v1  ;;  %731 = vmatprep.subr.mxu0 %v983_v1 }
  0x5c   :  { %721 = vmatpush3.msra.mxu1 %v332_v30  ;;  %732 = vmatpush3.msra.mxu0 %v328_v32  ;;  %p910_p5 = por %p909_p4, %p908_p3 }
  0x5d   :  { %722 = vmatprep.subr.mxu1 %v983_v1  ;;  %733 = vmatprep.subr.mxu0 %v983_v1 }
  0x5e   :  { %723 = vmatpush3.msra.mxu1 %v331_v33  ;;  %734 = vmatpush3.msra.mxu0 %v327_v34  ;;  %p911_p6 = pnand %p910_p5, %p904_p2 }
  0x5f   :  { %724 = vmatprep.subr.mxu1 %v983_v1  ;;  %735 = vmatprep.subr.mxu0 %v983_v1 }
  0x60   :  { %725 = vmatpush3.msra.mxu1 %v330_v35  ;;  %736 = vmatpush3.msra.mxu0 %v326_v36 }
  0x61   :  { %727 = vmatmul.mubr.msk.f32.vlgmr.msra.gmra.mxu1 %vm139_vm2, %v671_v37  ;;  %740 = vmatprep.subr.mxu1 %v983_v1 }
  0x62   :  { %748 = vmatprep.mubr.msk.f32.mxu1 %vm984_vm0, %v983_v1  ;;  %741 = vmatpush3.msra.mxu1 %v537_v61 }
  0x63   :  { %742 = vmatprep.subr.mxu1 %v983_v1 }
  0x64   :  { %743 = vmatpush3.msra.mxu1 %v536_v63 }
  0x65   :  { %744 = vmatprep.subr.mxu1 %v983_v1 }
  0x66   :  { %745 = vmatpush3.msra.mxu1 %v535_v0 }
  0x67   :  { %746 = vmatprep.subr.mxu1 %v983_v1 }
  0x68   :  { %747 = vmatpush3.msra.mxu1 %v534_v2 }
 0x115   :  { %v283_v10 = vpop.f32.mrf.mxu1 }
 0x117   :  { %v717_v11 = vpop.f32.mrf.mxu1 }
 0x119   :  { %v209_v13 = vpop.f32.mrf.mxu0 }
 0x11a   :  { %v284_v14 = vadd.f32 %v283_v10, %v209_v13 }
 0x11b   :  { %v710_v15 = vpop.f32.mrf.mxu0 }
 0x11c   :  { %v287_v16 = vadd.f32 %v666_v12, %v284_v14 }
 0x11e   :  { %767 = vtanh.f32 %v287_v16  ;;  %v669_v19 = vmul.f32 -1.442695, %v287_v16 }
 0x120   :  { %769 = vpow2.f32 %v669_v19 }
 0x121   :  { %v414_v42 = vpop.f32.mrf.mxu1 }
 0x123   :  { %v728_v43 = vpop.f32.mrf.mxu1 }
 0x12b   :  { %v768_v17 = vpop.eup %767 }
 0x12c   :  { %301 = vrot.lane.b32.xlu0 %v768_v17, %s985_s22 }
 0x12d   :  { %v770_v20 = vpop.eup %769 }
 0x12e   :  { %v291_v21 = vadd.f32 1.0, %v770_v20 }
 0x130   :  { %296 = vrot.lane.b32.xlu0 %v138_v18, %s986_s1  ;;  %771 = vrcp.f32 %v291_v21 }
 0x13d   :  { %v772_v22 = vpop.eup %771 }
 0x19e   :  { %v302_v23 = vpop.permute.xlu0 %301 }
 0x19f   :  { %v304_v24 = vmul.f32 %v772_v22, %v302_v23 }
 0x1a1   :  { %306 = vrot.lane.b32.xlu1 %v304_v24, %s986_s1 }
 0x1a2   :  { %v297_v25 = vpop.permute.xlu0 %296 }
 0x1a3   :  { %v299_v26 = vmul.f32 %v772_v22, %v297_v25 }
 0x213   :  { %v307_v27 = vpop.permute.xlu1 %306 }
 0x214   :  { %v1120_v28 = vadd.f32 %v307_v27, %v299_v26 }
 0x216   :  { %773 = vtanh.f32 %v1120_v28 }
 0x223   :  { %v774_v38 = vpop.eup %773 }
 0x224   :  { %312 = vrot.lane.b32.xlu1 %v774_v38, %s985_s22 }
 0x296   :  { %v313_v39 = vpop.permute.xlu1 %312 }
 0x297   :  { %v315_v40 = vmul.f32 %v772_v22, %v313_v39 }
 0x299   :  { %317 = vrot.lane.b32.xlu0 %v315_v40, %s986_s1 }
 0x29d   :  { %499 = vrot.lane.b32.xlu0 %v672_v41, %s986_s1 }
 0x30b   :  { %v318_v44 = vpop.permute.xlu0 %317 }
 0x30c   :  { %320 = vst.msk [vmem:[#allocation15] sm:$0xff] %vm139_vm2, %v318_v44  ;;  %738 = vmatmul.mubr.msk.f32.vlgmr.msra.gmra.mxu0 %vm139_vm2, %v318_v44 }
 0x30f   :  { %v500_v57 = vpop.permute.xlu0 %499 }
 0x3cc   :  { %v486_v46 = vpop.f32.mrf.mxu0 }
 0x3cd   :  { %v487_v47 = vadd.f32 %v486_v46, %v414_v42 }
 0x3ce   :  { %v739_v48 = vpop.f32.mrf.mxu0 }
 0x3cf   :  { %v490_v49 = vadd.f32 %v670_v45, %v487_v47 }
 0x3d1   :  { %775 = vtanh.f32 %v490_v49  ;;  %v675_v51 = vmul.f32 -1.442695, %v490_v49 }
 0x3d3   :  { %777 = vpow2.f32 %v675_v51 }
 0x3de   :  { %v776_v50 = vpop.eup %775 }
 0x3df   :  { %504 = vrot.lane.b32.xlu1 %v776_v50, %s985_s22 }
 0x3e0   :  { %v778_v52 = vpop.eup %777 }
 0x3e1   :  { %v494_v53 = vadd.f32 1.0, %v778_v52 }
 0x3e3   :  { %779 = vrcp.f32 %v494_v53 }
 0x3f0   :  { %v780_v54 = vpop.eup %779 }
 0x3f1   :  { %v502_v58 = vmul.f32 %v780_v54, %v500_v57 }
 0x451   :  { %v505_v55 = vpop.permute.xlu1 %504 }
 0x452   :  { %v507_v56 = vmul.f32 %v780_v54, %v505_v55 }
 0x454   :  { %509 = vrot.lane.b32.xlu1 %v507_v56, %s986_s1 }
 0x4c6   :  { %v510_v59 = vpop.permute.xlu1 %509 }
 0x4c7   :  { %v512_v60 = vadd.f32 %v510_v59, %v502_v58 }
 0x4c9   :  { %781 = vtanh.f32 %v512_v60 }
 0x4d6   :  { %v782_v62 = vpop.eup %781 }
 0x4d7   :  { %515 = vrot.lane.b32.xlu0 %v782_v62, %s985_s22 }
 0x549   :  { %v516_v3 = vpop.permute.xlu0 %515 }
 0x54a   :  { %v518_v4 = vmul.f32 %v780_v54, %v516_v3 }
 0x54c   :  { %v532_v5 = vmul.f32 0.01, %v518_v4  ;;  %520 = vrot.lane.b32.xlu0 %v518_v4, %s986_s1  ;;  %vm531_vm3 = vcmp.ge.f32.partialorder %v518_v4, 0.0 }
 0x54e   :  { %v533_v6 = vsel %vm531_vm3, %v518_v4, %v532_v5 }
 0x54f   :  { %v540_v7 = vrot.slane %v533_v6, 7 }
 0x550   :  { %526 = vrot.lane.b32.xlu0 %v512_v60, %s987_s18 }
 0x551   :  { %541 = vrot.lane.b32.xlu1 %v540_v7, %s986_s1 }
 0x555   :  { %322 = vrot.lane.b32.xlu1 %v1120_v28, %s987_s18 }
 0x5be   :  { %v521_v1 = vpop.permute.xlu0 %520 }
 0x5bf   :  { %524 = vst.msk [vmem:[#allocation15 + $0x8] sm:$0xff] %vm139_vm2, %v521_v1 }
 0x5c2   :  { %v527_v8 = vpop.permute.xlu0 %526 }
 0x5c3   :  { %530 = vst.msk [vmem:[#allocation17 + $0x8] sm:$0xff] %vm139_vm2, %v527_v8  ;;  %v542_v9 = vpop.permute.xlu1 %541 }
 0x5c4   :  { %749 = vmatmul.mubr.msk.f32.vlgmr.msra.gmra.mxu1 %vm139_vm2, %v542_v9 }
 0x5c7   :  { %v323_v10 = vpop.permute.xlu1 %322 }
 0x5c8   :  { %325 = vst.msk [vmem:[#allocation17] sm:$0xff] %vm139_vm2, %v323_v10 }
 0x5c9   :  { %914 = shalt.err (!%p911_p6)
}
 0x5ca   :  { %638 = dma.vmem_to_hbm [thread:$0]  %s633_s19, 256, %s1199_s12, [#allocation16], %s976_s30, %s976_s30, %s977_s14  }
 0x5cb   :  { %s989_s4 = smov [#allocation17]  }
 0x5cc   :  { %s644_s5 = sshll.u32 %s989_s4, 4  ;;  %s645_s5 = int_to_ptr.vmem [resolvable:$true] %s644_s5 }
 0x5cd   :  { %s923_s22 = scalar_lea.vmem %s645_s5, 256  ;;  %p928_p8 = scmp.lt.s32.totalorder %s645_s5, %s645_s5 }
 0x5ce   :  { %p924_p7 = scmp.ne.s32.totalorder %s645_s5, %s923_s22  ;;  %p929_p9 = scmp.lt.s32.totalorder %s923_s22, %s923_s22 }
 0x5d0   :  { %p930_p10 = por %p929_p9, %p928_p8 }
 0x5d2   :  { %p931_p11 = pnand %p930_p10, %p924_p7 }
 0x5d4   :  { %934 = shalt.err (!%p931_p11)
}
 0x5d5   :  { %650 = dma.vmem_to_hbm [thread:$0]  %s645_s5, 256, %s1200_s13, [#allocation16], %s976_s30, %s976_s30, %s977_s14   ;;  %v538_v11 = vld [vmem:[#allocation2] sm:$0x1]  ;;  %vm615_vm4 = vcmask 0  }
 0x5d6   :  { %s990_s1 = smov [#allocation14]  }
 0x5d7   :  { %s623_s12 = sshll.u32 %s990_s1, 4  ;;  %s624_s12 = int_to_ptr.vmem [resolvable:$true] %s623_s12 }
 0x5d8   :  { %s943_s25 = scalar_lea.vmem %s624_s12, 16  ;;  %s947_s26 = scalar_lea.vmem %s624_s12, 32 }
 0x5d9   :  { %p944_p12 = scmp.ne.s32.totalorder %s624_s12, %s943_s25  ;;  %p948_p13 = scmp.lt.s32.totalorder %s624_s12, %s624_s12 }
 0x5da   :  { %p949_p0 = scmp.lt.s32.totalorder %s947_s26, %s943_s25 }
 0x5dc   :  { %p950_p1 = por %p949_p0, %p948_p13 }
 0x5de   :  { %p951_p2 = pnand %p950_p1, %p944_p12 }
 0x684   :  { %v611_v12 = vpop.f32.mrf.mxu1 }
 0x685   :  { %v612_v13 = vadd.f32 %v611_v12, %v538_v11 }
 0x686   :  { %v750_v14 = vpop.f32.mrf.mxu1 }
 0x687   :  { %616 = vst.msk [vmem:[#allocation14] sm:$0x1] %vm615_vm4, %v612_v13 }
 0x688   :  { %954 = shalt.err (!%p951_p2)
}
 0x689   :  { %626 = dma.vmem_to_hbm [thread:$0]  %s624_s12, 16, %s1198_s11, [#allocation5]  }
 0x68a   :  { %971 = dma.done.wait [#allocation5], 16  }
 0x68b   :  { %972 = vsyncadd [#allocation5], 4294967280 }
 0x68c   :  { %973 = dma.done.wait [#allocation16], 512  }
 0x68d   :  { %974 = vsyncadd [#allocation16], 4294966784 }
 0x68e   :  { %660 = vsyncpa [#allocation4], 1 }
 0x68f   :  { %661 = vsyncpa [#allocation7], 1 }
 0x690   :  { %662 = vsyncpa [#allocation10], 1 }
 0x691   :  { %663 = vsyncpa [#allocation13], 1 }
 0x692   :  { %664 = vsyncpa [#allocation5], 1 }
 0x693   :  { %665 = vsyncpa [#allocation16], 1 }

</bundles_post_ra>
